<compile_context>
chip_gen: v7x
topology: tpu7x:2x2x1
jax: 0.10.0
libtpu: 0.0.40
codegen_flags: <defaults>
</compile_context>

<pallas_src>
import jax
import jax.numpy as jnp
import numpy as np
from jax.experimental import pallas as pl
from jax.experimental.pallas import tpu as pltpu


def _weighted_sum_kernel(w_ref, *refs):
    """w_ref: (B, D) f32 in SMEM.  refs = D input blocks of (1, C, TS) + output block."""
    *x_refs, o_ref = refs
    b = pl.program_id(0)
    # Stream the D layer tiles, accumulating in f32; one store per tile.
    acc = x_refs[0][...].astype(jnp.float32) * w_ref[b, 0]
    for d in range(1, len(x_refs)):
        acc = acc + x_refs[d][...].astype(jnp.float32) * w_ref[b, d]
    o_ref[...] = acc.astype(o_ref.dtype)


def _choose_spatial_tile(S, C, D, itemsize, vmem_budget_bytes=8 << 20):
    """Largest spatial tile whose double-buffered footprint fits the VMEM budget."""
    # Per pipeline step: D input blocks + 1 output block of (1, C, TS), each double-buffered.
    bytes_per_lane = 2 * (D + 1) * C * itemsize
    max_ts = max(128, vmem_budget_bytes // bytes_per_lane)
    if S <= max_ts:
        return S                       # full spatial extent: always a legal block shape
    ts = min(max_ts, 1024)             # 512-1024 lanes is the measured HBM-roofline sweet spot
    return max(128, (ts // 128) * 128)  # keep lane-dense multiple of 128


def attn_forward(xs, gamma, *, temperature=1.0, query_idx=-1, spatial_tile=None):
    """xs: list of D arrays of shape (B, C, H, W) (NCHW).  gamma: (C,)."""
    D = len(xs)
    B, C, H, W = xs[0].shape
    S = H * W
    dtype = xs[0].dtype
    itemsize = jnp.dtype(dtype).itemsize

    # ---- Squeeze + softmax: tiny (D*B*C) -> plain JAX, no big-tensor copies. ----
    gamma_f = gamma.astype(jnp.float32)
    squeezed = jnp.stack(
        [jnp.mean(x, axis=(2, 3)).astype(jnp.float32) * gamma_f[None, :] for x in xs]
    )                                                             # (D, B, C)
    logits = jnp.einsum('dbh,bh->bd', squeezed, squeezed[query_idx])
    attn = jax.nn.softmax(logits / float(temperature), axis=-1)   # (B, D)
    # Original module weights xs[i+1] with attn[:, i]; fold that mapping here.
    weight_index = jnp.asarray([0] + list(range(D - 1)), dtype=jnp.int32)
    w = jnp.take(attn, weight_index, axis=1).astype(jnp.float32)  # (B, D)

    # ---- Tiled streaming weighted sum. ----
    xs3 = [x.reshape(B, C, S) for x in xs]        # contiguous reshape, no copy
    if spatial_tile is None:
        TS = _choose_spatial_tile(S, C, D, itemsize)
    else:
        TS = min(int(spatial_tile), S)
        if TS < S:
            TS = max(128, (TS // 128) * 128)      # lane-dense multiple of 128
    n_tiles = pl.cdiv(S, TS)

    x_spec = pl.BlockSpec((1, C, TS), lambda b, t: (b, 0, t))
    w_spec = pl.BlockSpec(memory_space=pltpu.MemorySpace.SMEM)    # whole (B, D) in SMEM
    o_spec = pl.BlockSpec((1, C, TS), lambda b, t: (b, 0, t))

    # Explicit scoped-VMEM limit sized to the double-buffered tiles (+ slack).
    vmem_need = 2 * (D + 1) * C * TS * itemsize + (2 << 20)
    vmem_limit = int(max(vmem_need, 16 << 20))

    out = pl.pallas_call(
        _weighted_sum_kernel,
        out_shape=jax.ShapeDtypeStruct((B, C, S), dtype),
        grid_spec=pltpu.PrefetchScalarGridSpec(
            num_scalar_prefetch=0,
            grid=(B, n_tiles),
            in_specs=[w_spec] + [x_spec] * D,
            out_specs=o_spec,
        ),
        compiler_params=pltpu.CompilerParams(
            # Both axes independent -> megacore sharding on v7x, harmless elsewhere.
            dimension_semantics=("parallel", "parallel"),
            vmem_limit_bytes=vmem_limit,
        ),
        # Note: pipeline_mode=pl.Buffered(3) on x_spec can be swept if DMA is
        # still exposed at very small tiles; default double-buffering is kept here.
    )(w, *xs3)

    return out.reshape(B, C, H, W)


def attn_reference(xs, gamma, temperature=1.0, query_idx=-1):
    """Pure-JAX reference mirroring the PyTorch forward exactly."""
    squeezed = jnp.stack(
        [jnp.mean(x, axis=(2, 3)) * gamma[None, :] for x in xs])   # (D, B, C)
    attn = jnp.einsum('dbh,bh->bd', squeezed, squeezed[query_idx])
    attn = jax.nn.softmax(attn / temperature, axis=-1)
    next_x = xs[0] * attn[:, 0, None, None, None]
    for i, x in enumerate(xs[1:]):
        next_x = next_x + x * attn[:, i, None, None, None]
    return next_x


if __name__ == "__main__":
    def run_case(key, B, C, H, W, D, temperature, query_idx, spatial_tile):
        keys = jax.random.split(key, D + 1)
        xs = [jax.random.normal(keys[i], (B, C, H, W), jnp.float32) for i in range(D)]
        # LayerScaler parameter around its init_scale * ones initialization.
        gamma = jnp.ones((C,), jnp.float32) + 0.1 * jax.random.normal(keys[D], (C,), jnp.float32)
        out = attn_forward(xs, gamma, temperature=temperature, query_idx=query_idx,
                           spatial_tile=spatial_tile)
        out = jax.block_until_ready(out)
        ref = attn_reference(xs, gamma, temperature, query_idx)
        assert out.shape == (B, C, H, W)
        np.testing.assert_allclose(np.asarray(out), np.asarray(ref), rtol=1e-5, atol=1e-5)

    k1, k2, k3 = jax.random.split(jax.random.PRNGKey(0), 3)
    # 1) Basic shapes, auto tile (single spatial tile).
    run_case(k1, B=2, C=32, H=16, W=16, D=3, temperature=1.0, query_idx=-1, spatial_tile=None)
    # 2) Forced spatial tiling: S=256 split into two 128-lane tiles; non-default query/temp.
    run_case(k2, B=2, C=32, H=16, W=16, D=3, temperature=2.0, query_idx=0, spatial_tile=128)
    # 3) Ragged edge tile: S=200 with TS=128 (padded edge block), small channel count.
    run_case(k3, B=2, C=16, H=10, W=20, D=4, temperature=1.0, query_idx=-1, spatial_tile=128)

    print("KERNEL_OK")
</pallas_src>

<mosaic_0001>
module attributes {stable_mosaic.version = 11 : i64} {
  func.func @_weighted_sum_kernel(%arg0: i32, %arg1: i32, %arg2: memref<2x3xf32, #tpu.memory_space<smem>>, %arg3: memref<1x32x256xf32, #tpu.memory_space<vmem>>, %arg4: memref<1x32x256xf32, #tpu.memory_space<vmem>>, %arg5: memref<1x32x256xf32, #tpu.memory_space<vmem>>, %arg6: memref<1x32x256xf32, #tpu.memory_space<vmem>>) attributes {dimension_semantics = [#tpu.dimension_semantics<parallel>, #tpu.dimension_semantics<parallel>], iteration_bounds = array<i64: 2, 1>, scalar_prefetch = 0 : i64, scratch_operands = 0 : i64, tpu.core_type = #tpu.core_type<tc>, window_params = [{transform_indices = @transform_0, window_bounds = array<i64: 2, 3>}, {transform_indices = @transform_1, window_bounds = array<i64: 1, 32, 256>}, {transform_indices = @transform_2, window_bounds = array<i64: 1, 32, 256>}, {transform_indices = @transform_3, window_bounds = array<i64: 1, 32, 256>}, {transform_indices = @transform_4, window_bounds = array<i64: 1, 32, 256>}]} {
    %c0 = arith.constant 0 : index
    %c0_0 = arith.constant 0 : index
    %c0_1 = arith.constant 0 : index
    %0 = vector.load %arg3[%c0, %c0_0, %c0_1] : memref<1x32x256xf32, #tpu.memory_space<vmem>>, vector<1x32x256xf32>
    %1 = arith.index_cast %arg0 : i32 to index
    %c0_2 = arith.constant 0 : index
    %2 = memref.load %arg2[%1, %c0_2] : memref<2x3xf32, #tpu.memory_space<smem>>
    %3 = vector.broadcast %2 : f32 to vector<1x32x256xf32>
    %4 = arith.mulf %0, %3 : vector<1x32x256xf32>
    %c0_3 = arith.constant 0 : index
    %c0_4 = arith.constant 0 : index
    %c0_5 = arith.constant 0 : index
    %5 = vector.load %arg4[%c0_3, %c0_4, %c0_5] : memref<1x32x256xf32, #tpu.memory_space<vmem>>, vector<1x32x256xf32>
    %6 = arith.index_cast %arg0 : i32 to index
    %c1 = arith.constant 1 : index
    %7 = memref.load %arg2[%6, %c1] : memref<2x3xf32, #tpu.memory_space<smem>>
    %8 = vector.broadcast %7 : f32 to vector<1x32x256xf32>
    %9 = arith.mulf %5, %8 : vector<1x32x256xf32>
    %10 = arith.addf %4, %9 : vector<1x32x256xf32>
    %c0_6 = arith.constant 0 : index
    %c0_7 = arith.constant 0 : index
    %c0_8 = arith.constant 0 : index
    %11 = vector.load %arg5[%c0_6, %c0_7, %c0_8] : memref<1x32x256xf32, #tpu.memory_space<vmem>>, vector<1x32x256xf32>
    %12 = arith.index_cast %arg0 : i32 to index
    %c2 = arith.constant 2 : index
    %13 = memref.load %arg2[%12, %c2] : memref<2x3xf32, #tpu.memory_space<smem>>
    %14 = vector.broadcast %13 : f32 to vector<1x32x256xf32>
    %15 = arith.mulf %11, %14 : vector<1x32x256xf32>
    %16 = arith.addf %10, %15 : vector<1x32x256xf32>
    %c0_9 = arith.constant 0 : index
    %c0_10 = arith.constant 0 : index
    %c0_11 = arith.constant 0 : index
    %17 = vector.load %arg6[%c0_9, %c0_10, %c0_11] : memref<1x32x256xf32, #tpu.memory_space<vmem>>, vector<1x32x256xf32>
    tpu.vector_store %arg6[%c0_9, %c0_10, %c0_11], %16 {strides = array<i32>} : memref<1x32x256xf32, #tpu.memory_space<vmem>>, vector<1x32x256xf32>,
    return
  }
  func.func @transform_0(%arg0: i32, %arg1: i32) -> (i32, i32) {
    %c0_i32 = arith.constant 0 : i32
    %c0_i32_0 = arith.constant 0 : i32
    %c0_i32_1 = arith.constant 0 : i32
    return %c0_i32, %c0_i32_0 : i32, i32
  }
  func.func @transform_1(%arg0: i32, %arg1: i32) -> (i32, i32, i32) {
    %c0_i32 = arith.constant 0 : i32
    %c0_i32_0 = arith.constant 0 : i32
    return %arg0, %c0_i32, %arg1 : i32, i32, i32
  }
  func.func @transform_2(%arg0: i32, %arg1: i32) -> (i32, i32, i32) {
    %c0_i32 = arith.constant 0 : i32
    %c0_i32_0 = arith.constant 0 : i32
    return %arg0, %c0_i32, %arg1 : i32, i32, i32
  }
  func.func @transform_3(%arg0: i32, %arg1: i32) -> (i32, i32, i32) {
    %c0_i32 = arith.constant 0 : i32
    %c0_i32_0 = arith.constant 0 : i32
    return %arg0, %c0_i32, %arg1 : i32, i32, i32
  }
  func.func @transform_4(%arg0: i32, %arg1: i32) -> (i32, i32, i32) {
    %c0_i32 = arith.constant 0 : i32
    %c0_i32_0 = arith.constant 0 : i32
    return %arg0, %c0_i32, %arg1 : i32, i32, i32
  }
}

</mosaic_0001>

<bundles_post_ra>
// kernel: tpu_custom_call.1
= control target key start
LH: loop header
LB: loop body
LE: loop exit
PB: predicated region body
PF: predicated region fallthrough
CT: control target
= control target key end

     0   :  { %s1267_s0 = inlined_call_operand.hbm [shape: f32[2,3], index: 0, kind: input, shape index: {}]   ;;  %s1268_s1 = inlined_call_operand.hbm [shape: f32[2,32,256], index: 1, kind: input, shape index: {}]   ;;  %s1269_s2 = inlined_call_operand.hbm [shape: f32[2,32,256], index: 2, kind: input, shape index: {}]   ;;  %s1270_s3 = inlined_call_operand.hbm [shape: f32[2,32,256], index: 3, kind: input, shape index: {}]   ;;  %s1271_s4 = inlined_call_operand.hbm [shape: f32[2,32,256], index: 4, kind: output, shape index: {}]  }
   0x1   :  { %1287 = sst [smem:[#allocation20_spill]] %s1268_s1 }
   0x2   :  { %1288 = sst [smem:[#allocation21_spill]] %s1269_s2 }
   0x3   :  { %9 = vsyncpa [#allocation5], 0 }
   0x4   :  { %10 = vsyncpa [#allocation3], 0 }
   0x5   :  { %12 = vsyncpa [#allocation3 + $0x1], 0 }
   0x6   :  { %13 = vsyncpa [#allocation8], 0 }
   0x7   :  { %15 = vsyncpa [#allocation8 + $0x1], 0 }
   0x8   :  { %16 = vsyncpa [#allocation4], 0 }
   0x9   :  { %18 = vsyncpa [#allocation4 + $0x1], 0  ;;  %s926_s15 = smov 0   ;;  %s928_s16 = smov 0  }
   0xa   :  { %s930_s17 = smov 0   ;;  %s932_s18 = smov 0  }
   0xb   :  { %s934_s19 = smov 0   ;;  %s936_s20 = smov 0  }
   0xc LB: > { %1289 = sst [smem:[#allocation15_spill]] %s886_s19  ;;  %s36_s21 = sadd.s32 1, %s886_s19  ;;  %s890_s20 = sphi %s936_s20, %s24_s20   ;;  %s886_s19 = sphi %s934_s19, %s1318_s19   ;;  %s882_s18 = sphi %s932_s18, %s1317_s18   ;;  %s878_s17 = sphi %s930_s17, %s1321_s17   ;;  %s874_s16 = sphi %s928_s16, %s1320_s16   ;;  %s870_s15 = sphi %s926_s15, %s1319_s15  }
   0xd   : > { %1290 = sst [smem:[#allocation16_spill]] %s890_s20  ;;  %s66_s22 = sadd.s32 1, %s878_s17 }
   0xe   : > { %p38_p0 = scmp.ge.s32.totalorder %s36_s21, 2  ;;  %p1272_p1 = scmp.ne.s32.totalorder %s878_s17, %s874_s16 }
   0xf   : > { %p74_p2 = scmp.eq.s32.totalorder %s890_s20, 0  ;;  %p641_p5 = scmp.lt.s32.totalorder %s890_s20, 2 }
  0x10   : > { %s1323_s21 = smov (%p38_p0, %s36_s21), 0  ;;  %s196_s24 = sand.u32 1, %s878_s17  }
  0x11   : > { %1291 = sst [smem:[#allocation17_spill]] %s1323_s21  ;;  %p75_p4 = por %p74_p2, %p1272_p1 }
  0x12   : > { %s61_s23 = ssub.s32 %s886_s19, %s1323_s21  ;;  %s973_s25 = sshll.u32 %s196_s24, 6 }
  0x13   : > { %p64_p6 = scmp.eq.s32.totalorder %s61_s23, 0  ;;  %s976_s26 = sshll.u32 %s886_s19, 10 }
  0x14   : > { %p978_p7 = pnand %p641_p5, %p75_p4  ;;  %s219_s29 = sand.u32 1, %s890_s20  }
  0x15   : > { %s983_s28 = scalar_select %p64_p6, %s878_s17, %s66_s22  }
  0x16   : > { %s1294_s2 = sld [smem:[#allocation21_spill]]  ;;  %s223_s7 = scalar_lea.vmem [#allocation7], %s973_s25 }
  0x17   : > { %1293 = sst [smem:[#allocation18_spill]] %s983_s28  ;;  %s232_s8 = sshll.u32 %s223_s7, 4  ;;  %s993_s8 = int_to_ptr.vmem [resolvable:$true] %s232_s8 }
  0x18   : > { %s995_s9 = scalar_lea.sflag [#allocation8], %s219_s29  ;;  %p1001_p9 = pneg %p978_p7 }
  0x1c   : > { %s990_s6 = scalar_lea.hbm %s1294_s2, %s976_s26  ;;  %s702_s14 = scalar_lea.hbm %s1294_s2, 2048 }
  0x1d   : > { %s697_s10 = scalar_lea.hbm %s990_s6, 1024  ;;  %p703_p12 = scmp.lt.u32.totalorder %s990_s6, %s1294_s2 }
  0x1e   : > { %p698_p8 = scmp.ne.s32.totalorder %s990_s6, %s697_s10  ;;  %p704_p13 = scmp.lt.u32.totalorder %s702_s14, %s697_s10 }
  0x1f   : > { %p706_p2 = scmp.lt.u32.totalorder %s697_s10, %s990_s6 }
  0x20   : > { %p700_p10 = pnand %p1001_p9, %p698_p8  ;;  %p705_p0 = por %p704_p13, %p703_p12 }
  0x22   : > { %p701_p11 = pneg %p700_p10  ;;  %p707_p4 = por %p706_p2, %p705_p0 }
  0x24   : > { %p708_p5 = pnand %p707_p4, %p701_p11 }
  0x26   : > { %711 = shalt.err (!%p708_p5)
}
  0x27   : > { %s712_s29 = scalar_lea.vmem %s993_s8, 1024  ;;  %s892_s30 = smov [#allocation7]  }
  0x28   : > { %p713_p6 = scmp.ne.s32.totalorder %s993_s8, %s712_s29  ;;  %s717_s5 = sshll.u32 %s892_s30, 4  ;;  %s718_s5 = int_to_ptr.vmem [resolvable:$false] %s717_s5 }
  0x29   : > { %s719_s7 = scalar_lea.vmem %s718_s5, 2048  ;;  %p720_p3 = scmp.lt.s32.totalorder %s993_s8, %s718_s5 }
  0x2a   : > { %p715_p8 = pnand %p713_p6, %p1001_p9  ;;  %p721_p1 = scmp.lt.s32.totalorder %s719_s7, %s712_s29 }
  0x2c   : > { %p716_p10 = pneg %p715_p8  ;;  %p722_p12 = por %p721_p1, %p720_p3 }
  0x2e   : > { %p723_p13 = pnand %p722_p12, %p716_p10 }
  0x30   : > { %726 = shalt.err (!%p723_p13)
}
  0x31   : > { %s1273_s10 = smov 256   ;;  %s1275_s12 = smov 16  }
  0x32   : > { %632 = dma.hbm_to_vmem [thread:$0]  (!%p978_p7), %s990_s6, 1024, %s993_s8, %s995_s9, %s1273_s10, %s1273_s10, %s1275_s12  }
  0x33   : > { %s1029_s13 = sadd.s32 4294967295, %s890_s20   ;;  %s581_s14 = sadd.s32 4294967294, %s890_s20  }
  0x34   : > { %p79_p1 = scmp.ne.s32.totalorder %s874_s16, %s870_s15  ;;  %p1282_p3 = scmp.eq.s32.totalorder %s1029_s13, 0 }
  0x35   : > { %p161_p11 = scmp.eq.s32.totalorder %s1029_s13, 1  ;;  %p167_p0 = scmp.eq.s32.totalorder %s581_s14, 1 }
  0x36   : > { %p582_p2 = scmp.ge.s32.totalorder %s890_s20, 1  ;;  %p1039_p4 = por %p1282_p3, %p79_p1 }
  0x37   : > { %p1297_p5 = scmp.ne.s32.totalorder %s878_s17, %s874_s16  ;;  %p1050_p8 = por %p167_p0, %p79_p1 }
  0x38   : > { %s1296_s22 = scalar_select %p1039_p4, 1, 0 }
  0x39   : > { %p1046_p6 = por %p161_p11, %p1297_p5  ;;  %p174_p10 = scmp.lt.s32.totalorder %s890_s20, 3 }
  0x3a   : > { %s1299_s8 = scalar_select %p1050_p8, 1, 0 }
  0x3b   : > { %s1298_s6 = scalar_select %p1046_p6, 1, 0 }
  0x3c   : > { %1300 = sst [smem:[#allocation19_spill]] %s1299_s8  ;;  %p1055_p12 = pnand %p582_p2, %p174_p10 }
  0x3d   : > { %s1302_s1 = sld [smem:[#allocation20_spill]]  ;;  %s200_s7 = scalar_lea.vmem [#allocation6], %s973_s25 }
  0x3e   : > { %s1301_s23 = scalar_select %p1055_p12, 1, 0 }
  0x3f   : > { %p622_p13 = pneg %p1055_p12  ;;  %s209_s14 = sshll.u32 %s200_s7, 4  ;;  %s1068_s14 = int_to_ptr.vmem [resolvable:$true] %s209_s14 }
  0x40   : > { %s1080_s30 = scalar_lea.hbm %s1270_s3, %s976_s26  ;;  %s1084_s2 = scalar_lea.sflag [#allocation3], %s196_s24 }
  0x41   : > { %p1072_p1 = pnand %p622_p13, %p1282_p3 }
  0x43   : > { %s1063_s5 = scalar_lea.hbm %s1302_s1, %s976_s26  ;;  %s732_s28 = scalar_lea.hbm %s1302_s1, 2048 }
  0x44   : > { %s1303_s10 = scalar_select %p1072_p1, 1, 0 }
  0x45   : > { %s727_s21 = scalar_lea.hbm %s1063_s5, 1024  ;;  %p733_p5 = scmp.lt.u32.totalorder %s1063_s5, %s1302_s1 }
  0x46   : > { %p728_p11 = scmp.ne.s32.totalorder %s1063_s5, %s727_s21  ;;  %p734_p10 = scmp.lt.u32.totalorder %s732_s28, %s727_s21 }
  0x47   : > { %p736_p3 = scmp.lt.u32.totalorder %s727_s21, %s1063_s5 }
  0x48   : > { %p730_p0 = pnand %p728_p11, %p1001_p9  ;;  %p735_p13 = por %p734_p10, %p733_p5 }
  0x4a   : > { %p731_p2 = pneg %p730_p0  ;;  %p737_p8 = por %p736_p3, %p735_p13 }
  0x4c   : > { %p738_p6 = pnand %p737_p8, %p731_p2 }
  0x4e   : > { %741 = shalt.err (!%p738_p6)
}
  0x4f   : > { %s742_s24 = scalar_lea.vmem %s1068_s14, 1024  ;;  %s895_s19 = smov [#allocation6]  }
  0x50   : > { %p743_p11 = scmp.ne.s32.totalorder %s1068_s14, %s742_s24  ;;  %s747_s26 = sshll.u32 %s895_s19, 4  ;;  %s748_s26 = int_to_ptr.vmem [resolvable:$false] %s747_s26 }
  0x51   : > { %s749_s20 = scalar_lea.vmem %s748_s26, 2048  ;;  %p750_p12 = scmp.lt.s32.totalorder %s1068_s14, %s748_s26 }
  0x52   : > { %p745_p0 = pnand %p743_p11, %p1001_p9  ;;  %p751_p1 = scmp.lt.s32.totalorder %s749_s20, %s742_s24 }
  0x54   : > { %p746_p4 = pneg %p745_p0  ;;  %p752_p5 = por %p751_p1, %p750_p12 }
  0x56   : > { %p753_p10 = pnand %p752_p5, %p746_p4 }
  0x58   : > { %756 = shalt.err (!%p753_p10)
}
  0x59   : > { %s1304_s21 = smov 16   ;;  %s1305_s28 = smov 256  }
  0x5a   : > { %629 = dma.hbm_to_vmem [thread:$0]  (!%p978_p7), %s1063_s5, 1024, %s1068_s14, %s1084_s2, %s1305_s28, %s1305_s28, %s1304_s21  }
  0x5b   : > { %s246_s12 = scalar_lea.vmem [#allocation9], %s973_s25  ;;  %s757_s24 = scalar_lea.hbm %s1267_s0, 32 }
  0x5c   : > { %s255_s8 = sshll.u32 %s246_s12, 4  ;;  %p758_p3 = scmp.ne.s32.totalorder %s1267_s0, %s757_s24  ;;  %s1128_s8 = int_to_ptr.vmem [resolvable:$true] %s255_s8 }
  0x5d   : > { %p1306_p4 = scmp.ne.s32.totalorder %s1303_s10, 0  ;;  %p764_p1 = scmp.lt.u32.totalorder %s757_s24, %s1267_s0 }
  0x5f   : > { %p759_p6 = pneg %p1306_p4 }
  0x61   : > { %p760_p8 = pnand %p759_p6, %p758_p3 }
  0x63   : > { %p761_p12 = pneg %p760_p8 }
  0x65   : > { %p766_p2 = pnand %p764_p1, %p761_p12 }
  0x67   : > { %769 = shalt.err (!%p766_p2)
}
  0x68   : > { %s896_s2 = smov [#allocation2]   ;;  %s770_s14 = scalar_lea.hbm %s1080_s30, 1024 }
  0x69   : > { %625 = dma.hbm_to_smem (!%p1306_p4), %s1267_s0, 32, %s896_s2, [#allocation5]  }
  0x6a   : > { %p771_p13 = scmp.ne.s32.totalorder %s1080_s30, %s770_s14  ;;  %s775_s10 = scalar_lea.hbm %s1270_s3, 2048 }
  0x6b   : > { %p776_p5 = scmp.lt.u32.totalorder %s1080_s30, %s1270_s3  ;;  %p777_p10 = scmp.lt.u32.totalorder %s775_s10, %s770_s14 }
  0x6c   : > { %p773_p11 = pnand %p771_p13, %p1001_p9  ;;  %p779_p6 = scmp.lt.u32.totalorder %s770_s14, %s1080_s30 }
  0x6d   : > { %p778_p3 = por %p777_p10, %p776_p5 }
  0x6e   : > { %p774_p0 = pneg %p773_p11 }
  0x6f   : > { %p780_p8 = por %p779_p6, %p778_p3 }
  0x71   : > { %p781_p4 = pnand %p780_p8, %p774_p0 }
  0x73   : > { %784 = shalt.err (!%p781_p4)
}
  0x74   : > { %s785_s24 = scalar_lea.vmem %s1128_s8, 1024  ;;  %s897_s19 = smov [#allocation9]  }
  0x75   : > { %p786_p12 = scmp.ne.s32.totalorder %s1128_s8, %s785_s24  ;;  %s790_s26 = sshll.u32 %s897_s19, 4  ;;  %s791_s26 = int_to_ptr.vmem [resolvable:$false] %s790_s26 }
  0x76   : > { %s792_s20 = scalar_lea.vmem %s791_s26, 2048  ;;  %p793_p13 = scmp.lt.s32.totalorder %s1128_s8, %s791_s26 }
  0x77   : > { %p788_p1 = pnand %p786_p12, %p1001_p9  ;;  %p794_p11 = scmp.lt.s32.totalorder %s792_s20, %s785_s24 }
  0x79   : > { %p789_p2 = pneg %p788_p1  ;;  %p795_p5 = por %p794_p11, %p793_p13 }
  0x7b   : > { %p796_p10 = pnand %p795_p5, %p789_p2 }
  0x7d   : > { %799 = shalt.err (!%p796_p10)
}
  0x7e   : > { %635 = dma.hbm_to_vmem [thread:$0]  (!%p978_p7), %s1080_s30, 1024, %s1128_s8, %s995_s9, %s1305_s28, %s1305_s28, %s1304_s21  }
  0x7f   : > { %p1307_p9 = scmp.ne.s32.totalorder %s1301_s23, 0 }
  0x80   : > { %p1308_p0 = scmp.eq.s32.totalorder (!%p1307_p9), %s1029_s13, 0 }
  0x81   : > { %267 = sbr.rel (%p1307_p9) target bundleno = 184 (0xb8), region = 36 }
  0x88   : > { %853 = dma.done.wait (%p1308_p0), [#allocation5], 32   ;;  %p1309_p3 = pmov %p1308_p0 }
  0x89   : > { %s1162_s11 = sand.u32 1, %s874_s16   ;;  %p1310_p7 = scmp.ne.s32.totalorder %s1296_s22, 0 }
  0x8a   : > { %855 = vsyncadd (%p1309_p3), [#allocation5], 4294967264  ;;  %s1165_s27 = sshll.u32 %s1162_s11, 6  ;;  %s274_s2 = scalar_lea.sflag [#allocation3], %s1162_s11 }
  0x8b   : > { %s1169_s9 = scalar_lea.vmem [#allocation6], %s1165_s27 }
  0x8c   : > { %857 = dma.done.wait (%p1310_p7), %s274_s2, 1024  }
  0x8d   : > { %859 = vsyncadd (%p1310_p7), %s274_s2, 4294966272  ;;  %s282_s23 = sand.u32 1, %s1029_s13   ;;  %s1177_s21 = scalar_lea.vmem [#allocation7], %s1165_s27 }
  0x8e   : > { %s283_s30 = scalar_lea.sflag [#allocation8], %s282_s23 }
  0x8f   : > { %861 = dma.done.wait (%p1310_p7), %s283_s30, 2048  }
  0x90   : > { %863 = vsyncadd (%p1310_p7), %s283_s30, 4294965248  ;;  %s1184_s28 = scalar_lea.vmem [#allocation9], %s1165_s27 }
  0x91   : > { %300 = sfence }
  0x92   : > { %s600_s13 = sshll.u32 %s882_s18, 7  ;;  %v335_v0 = vld [vmem:[%s1169_s9] sm:$0xff]  ;;  %v336_v2 = vld [vmem:[%s1169_s9 + $0x8] sm:$0xff]  ;;  %v337_v3 = vld [vmem:[%s1169_s9 + $0x10] sm:$0xff]  ;;  %s330_s1 = scalar_lea.vmem [#allocation10], %s1165_s27 }
  0x93   : > { %s344_s8 = sld [smem:[#allocation2 + %s600_s13]]  ;;  %s362_s25 = sadd.s32 1, %s600_s13  ;;  %v354_v1 = vld [vmem:[%s1177_s21] sm:$0xff]  ;;  %v355_v5 = vld [vmem:[%s1177_s21 + $0x8] sm:$0xff]  ;;  %v356_v6 = vld [vmem:[%s1177_s21 + $0x10] sm:$0xff] }
  0x94   : > { %s363_s22 = sld [smem:[#allocation2 + %s362_s25]]  ;;  %s389_s5 = sadd.s32 2, %s600_s13  ;;  %v381_v4 = vld [vmem:[%s1184_s28] sm:$0xff]  ;;  %v382_v8 = vld [vmem:[%s1184_s28 + $0x8] sm:$0xff]  ;;  %v383_v9 = vld [vmem:[%s1184_s28 + $0x10] sm:$0xff] }
  0x95   : > { %s390_s14 = sld [smem:[#allocation2 + %s389_s5]]  ;;  %v338_v10 = vld [vmem:[%s1169_s9 + $0x18] sm:$0xff]  ;;  %v339_v21 = vld [vmem:[%s1169_s9 + $0x20] sm:$0xff]  ;;  %v340_v32 = vld [vmem:[%s1169_s9 + $0x28] sm:$0xff]  ;;  %s432_s12 = sshll.u32 %s330_s1, 4  ;;  %s1213_s12 = int_to_ptr.vmem [resolvable:$true] %s432_s12 }
  0x96   : > { %v357_v15 = vld [vmem:[%s1177_s21 + $0x18] sm:$0xff]  ;;  %v358_v22 = vld [vmem:[%s1177_s21 + $0x20] sm:$0xff]  ;;  %v359_v33 = vld [vmem:[%s1177_s21 + $0x28] sm:$0xff]  ;;  %s609_s10 = sshll.u32 %s882_s18, 10  ;;  %s417_s19 = scalar_lea.sflag [#allocation4], %s1162_s11 }
  0x97   : > { %v384_v16 = vld [vmem:[%s1184_s28 + $0x18] sm:$0xff]  ;;  %v385_v23 = vld [vmem:[%s1184_s28 + $0x20] sm:$0xff]  ;;  %v386_v34 = vld [vmem:[%s1184_s28 + $0x28] sm:$0xff]  ;;  %s1218_s24 = scalar_lea.hbm %s1271_s4, %s609_s10  ;;  %s800_s18 = scalar_lea.vmem %s1213_s12, 1024 }
  0x98   : > { %v341_v39 = vld [vmem:[%s1169_s9 + $0x30] sm:$0xff]  ;;  %v342_v46 = vld [vmem:[%s1169_s9 + $0x38] sm:$0xff]  ;;  %p801_p6 = scmp.ne.s32.totalorder %s1213_s12, %s800_s18  ;;  %p1311_p8 = scmp.ne.s32.totalorder %s1298_s6, 0 }
  0x99   : > { %v345_v7 = vstv %s344_s8  ;;  %v360_v40 = vld [vmem:[%s1177_s21 + $0x30] sm:$0xff]  ;;  %v361_v47 = vld [vmem:[%s1177_s21 + $0x38] sm:$0xff]  ;;  %s898_s26 = smov [#allocation10]  }
  0x9a   : > { %v346_v11 = vmul.f32 %v345_v7, %v335_v0  ;;  %v364_v12 = vstv %s363_s22  ;;  %v347_v13 = vmul.f32 %v345_v7, %v336_v2  ;;  %v348_v14 = vmul.f32 %v345_v7, %v337_v3  ;;  %v387_v41 = vld [vmem:[%s1184_s28 + $0x30] sm:$0xff]  ;;  %v388_v52 = vld [vmem:[%s1184_s28 + $0x38] sm:$0xff]  ;;  %p802_p4 = pnand %p801_p6, %p1311_p8  ;;  %s804_s20 = sshll.u32 %s898_s26, 4  ;;  %s805_s20 = int_to_ptr.vmem [resolvable:$false] %s804_s20 }
  0x9b   : > { %v365_v17 = vmul.f32 %v364_v12, %v354_v1  ;;  %v391_v18 = vstv %s390_s14  ;;  %v366_v19 = vmul.f32 %v364_v12, %v355_v5  ;;  %v367_v20 = vmul.f32 %v364_v12, %v356_v6  ;;  %s806_s27 = scalar_lea.vmem %s805_s20, 2048  ;;  %p807_p1 = scmp.lt.s32.totalorder %s1213_s12, %s805_s20 }
  0x9c   : > { %v392_v24 = vmul.f32 %v391_v18, %v381_v4  ;;  %v393_v25 = vmul.f32 %v391_v18, %v382_v8  ;;  %v394_v26 = vmul.f32 %v391_v18, %v383_v9  ;;  %v349_v27 = vmul.f32 %v345_v7, %v338_v10  ;;  %p803_p12 = pneg %p802_p4  ;;  %p808_p2 = scmp.lt.s32.totalorder %s806_s27, %s800_s18 }
  0x9d   : > { %v373_v28 = vadd.f32 %v365_v17, %v346_v11  ;;  %v374_v29 = vadd.f32 %v366_v19, %v347_v13  ;;  %v375_v30 = vadd.f32 %v367_v20, %v348_v14  ;;  %v368_v31 = vmul.f32 %v364_v12, %v357_v15 }
  0x9e   : > { %v395_v35 = vmul.f32 %v391_v18, %v384_v16  ;;  %v350_v36 = vmul.f32 %v345_v7, %v339_v21  ;;  %v369_v37 = vmul.f32 %v364_v12, %v358_v22  ;;  %v396_v38 = vmul.f32 %v391_v18, %v385_v23  ;;  %p809_p13 = por %p808_p2, %p807_p1 }
  0x9f   : > { %v400_v42 = vadd.f32 %v392_v24, %v373_v28  ;;  %v401_v43 = vadd.f32 %v393_v25, %v374_v29  ;;  %v402_v44 = vadd.f32 %v394_v26, %v375_v30  ;;  %v376_v45 = vadd.f32 %v368_v31, %v349_v27 }
  0xa0   : > { %v377_v48 = vadd.f32 %v369_v37, %v350_v36  ;;  %v351_v49 = vmul.f32 %v345_v7, %v340_v32  ;;  %v370_v50 = vmul.f32 %v364_v12, %v359_v33  ;;  %v397_v51 = vmul.f32 %v391_v18, %v386_v34  ;;  %p810_p11 = pnand %p809_p13, %p803_p12 }
  0xa1   : > { %408 = vst [vmem:[%s330_s1] sm:$0xff] %v400_v42  ;;  %409 = vst [vmem:[%s330_s1 + $0x8] sm:$0xff] %v401_v43  ;;  %v403_v53 = vadd.f32 %v395_v35, %v376_v45  ;;  %v352_v54 = vmul.f32 %v345_v7, %v341_v39  ;;  %v371_v55 = vmul.f32 %v364_v12, %v360_v40 }
  0xa2   : > { %410 = vst [vmem:[%s330_s1 + $0x10] sm:$0xff] %v402_v44  ;;  %v398_v56 = vmul.f32 %v391_v18, %v387_v41  ;;  %v404_v57 = vadd.f32 %v396_v38, %v377_v48  ;;  %v378_v58 = vadd.f32 %v370_v50, %v351_v49  ;;  %v353_v59 = vmul.f32 %v345_v7, %v342_v46 }
  0xa3   : > { %v372_v60 = vmul.f32 %v364_v12, %v361_v47  ;;  %411 = vst [vmem:[%s330_s1 + $0x18] sm:$0xff] %v403_v53  ;;  %v379_v61 = vadd.f32 %v371_v55, %v352_v54  ;;  %v399_v62 = vmul.f32 %v391_v18, %v388_v52 }
  0xa4   : > { %412 = vst [vmem:[%s330_s1 + $0x20] sm:$0xff] %v404_v57  ;;  %v405_v63 = vadd.f32 %v397_v51, %v378_v58 }
  0xa5   : > { %v380_v0 = vadd.f32 %v372_v60, %v353_v59  ;;  %v406_v1 = vadd.f32 %v398_v56, %v379_v61 }
  0xa6   : > { %413 = vst [vmem:[%s330_s1 + $0x28] sm:$0xff] %v405_v63 }
  0xa7   : > { %v407_v2 = vadd.f32 %v399_v62, %v380_v0  ;;  %414 = vst [vmem:[%s330_s1 + $0x30] sm:$0xff] %v406_v1 }
  0xa9   : > { %415 = vst [vmem:[%s330_s1 + $0x38] sm:$0xff] %v407_v2 }
  0xaa   : > { %813 = shalt.err (!%p810_p11)
}
  0xab   : > { %s814_s2 = scalar_lea.hbm %s1218_s24, 1024  ;;  %s818_s30 = scalar_lea.hbm %s1271_s4, 2048 }
  0xac   : > { %p815_p5 = scmp.ne.s32.totalorder %s1218_s24, %s814_s2  ;;  %p819_p0 = scmp.lt.u32.totalorder %s1218_s24, %s1271_s4 }
  0xad   : > { %p820_p3 = scmp.lt.u32.totalorder %s818_s30, %s814_s2  ;;  %p822_p6 = scmp.lt.u32.totalorder %s814_s2, %s1218_s24 }
  0xae   : > { %p816_p10 = pnand %p815_p5, %p1311_p8 }
  0xaf   : > { %p821_p7 = por %p820_p3, %p819_p0 }
  0xb0   : > { %p817_p9 = pneg %p816_p10 }
  0xb1   : > { %p823_p4 = por %p822_p6, %p821_p7 }
  0xb3   : > { %p824_p12 = pnand %p823_p4, %p817_p9 }
  0xb5   : > { %827 = shalt.err (!%p824_p12)
}
  0xb6   : > { %s899_s13 = smov 256   ;;  %s900_s8 = smov 16  }
  0xb7   : > { %620 = dma.vmem_to_hbm [thread:$0]  (%p1311_p8), %s1213_s12, 1024, %s1218_s24, %s417_s19, %s899_s13, %s899_s13, %s900_s8  }
  0xb8 PF: > { %s1312_s25 = sld [smem:[#allocation19_spill]]  ;;  %s1313_s22 = sld [smem:[#allocation16_spill]] }
  0xb9   : > { %s447_s5 = sand.u32 1, %s870_s15  }
  0xba   : > { %s448_s14 = scalar_lea.sflag [#allocation4], %s447_s5 }
  0xbe   : > { %p1314_p1 = scmp.ne.s32.totalorder %s1312_s25, 0  ;;  %p1315_p2 = scmp.ge.s32.totalorder %s1313_s22, 2 }
  0xc0   : > { %p637_p13 = pnand %p1315_p2, %p1314_p1 }
  0xc2   : > { %865 = dma.done.wait (!%p637_p13), %s448_s14, 1024  }
  0xc3   : > { %867 = vsyncadd (!%p637_p13), %s448_s14, 4294966272  ;;  %s24_s20 = sadd.s32 1, %s1313_s22   ;;  %s1316_s1 = sld [smem:[#allocation18_spill]] }
  0xc4   : > { %p21_p11 = scmp.ge.s32.totalorder %s24_s20, 4   ;;  %s1317_s18 = sld [smem:[#allocation15_spill]] }
  0xc5   : > { %s1318_s19 = sld [smem:[#allocation17_spill]]  ;;  %s1319_s15 = smov %s874_s16 }
  0xc6   : > { %s1320_s16 = smov %s878_s17  ;;  %23 = sbr.rel (!%p21_p11) target bundleno = 12 (0xc), region = 110 }
  0xc9   : > { %s1321_s17 = smov %s1316_s1 }
  0xcd   :  { %453 = vsyncpa [#allocation3], 1 }
  0xce   :  { %455 = vsyncpa [#allocation3 + $0x1], 1 }
  0xcf   :  { %456 = vsyncpa [#allocation8], 1 }
  0xd0   :  { %458 = vsyncpa [#allocation8 + $0x1], 1 }
  0xd1   :  { %459 = vsyncpa [#allocation4], 1 }
  0xd2   :  { %461 = vsyncpa [#allocation4 + $0x1], 1 }
  0xd3   :  { %462 = vsyncpa [#allocation5], 1 }
  0xd4   :  { %464 = vsyncpa [#allocation5 + $0x1], 1 }

</bundles_post_ra>
